<compile_context>
chip_gen: v5e
topology: v5e:2x2
jax: 0.10.0
libtpu: 0.0.40
codegen_flags: <defaults>
</compile_context>

<pallas_src>
import jax
import jax.numpy as jnp
from jax.experimental import pallas as pl
from jax.experimental.pallas import tpu as pltpu

_IN_ = 15
_H1_ = 16
_H2_ = 16
_OUT_ = 2


def _round_up(n, m):
    return ((n + m - 1) // m) * m


def _mlp_softmax_kernel(x_ref, w1_ref, b1_ref, w2_ref, b2_ref, w3_ref, b3_ref, o_ref):
    # Everything lives in a [features, batch] layout: batch on the lane (128-wide) axis.
    x = x_ref[...]                                                        # (15, TB) f32

    h1 = jnp.dot(w1_ref[...], x, preferred_element_type=jnp.float32)     # (16, TB)
    h1 = jnp.maximum(h1 + b1_ref[...], 0.0)                              # bias + ReLU

    h2 = jnp.dot(w2_ref[...], h1, preferred_element_type=jnp.float32)    # (16, TB)
    h2 = jnp.maximum(h2 + b2_ref[...], 0.0)

    logits = jnp.dot(w3_ref[...], h2, preferred_element_type=jnp.float32) + b3_ref[...]  # (2, TB)

    # Numerically stable softmax over the tiny class axis (axis 0); batch stays on lanes.
    m = jnp.max(logits, axis=0, keepdims=True)
    e = jnp.exp(logits - m)
    denom = jnp.sum(e, axis=0, keepdims=True)
    o_ref[...] = (e / denom).astype(o_ref.dtype)


def _choose_tile(batch, tb):
    """Lane-aligned batch tile; keep >= 2 grid steps for moderate batches (v7x megacore)."""
    if batch <= 256:
        return batch  # single tile; block last dim == full array dim is legal
    tb_eff = min(tb, _round_up(pl.cdiv(batch, 2), 128))
    return max(128, (tb_eff // 128) * 128)


def shallow_nn_forward(x, params, *, tb=8192):
    """Forward pass matching shallowNN: x is [B, 15] -> probabilities [B, 2].

    The compute runs in a [feature, batch] layout; the boundary transpose (and tail pad,
    when needed) is a single fused XLA pass. Callers that already hold feature-major
    data can feed the pallas_call directly and skip both transposes.
    """
    w1, b1, w2, b2, w3, b3 = params
    B = x.shape[0]

    tb_eff = _choose_tile(B, tb)
    b_pad = _round_up(B, tb_eff)
    grid = (b_pad // tb_eff,)

    xt = x.T                                              # [15, B]
    if b_pad != B:
        xt = jnp.pad(xt, ((0, 0), (0, b_pad - B)))        # pad only the tail tile

    # PyTorch-layout weights [out, in]; biases as [out, 1] columns (broadcast over lanes).
    b1c = b1.reshape(_H1_, 1)
    b2c = b2.reshape(_H2_, 1)
    b3c = b3.reshape(_OUT_, 1)

    const = lambda shape: pl.BlockSpec(shape, lambda i: (0, 0))  # weights resident in VMEM

    flops = 2 * B * (_IN_ * _H1_ + _H1_ * _H2_ + _H2_ * _OUT_)
    bytes_accessed = 4 * (B * (_IN_ + _OUT_)
                          + _IN_ * _H1_ + _H1_ + _H1_ * _H2_ + _H2_ + _H2_ * _OUT_ + _OUT_)

    out_t = pl.pallas_call(
        _mlp_softmax_kernel,
        out_shape=jax.ShapeDtypeStruct((_OUT_, b_pad), jnp.float32),
        grid=grid,
        in_specs=[
            pl.BlockSpec((_IN_, tb_eff), lambda i: (0, i)),   # x tile, pipelined over batch lanes
            const((_H1_, _IN_)), const((_H1_, 1)),
            const((_H2_, _H1_)), const((_H2_, 1)),
            const((_OUT_, _H2_)), const((_OUT_, 1)),
        ],
        out_specs=pl.BlockSpec((_OUT_, tb_eff), lambda i: (0, i)),
        compiler_params=pltpu.CompilerParams(
            dimension_semantics=("parallel",),   # batch axis -> both TCs on v7x; no-op on v5e/v6e
        ),
        cost_estimate=pl.CostEstimate(
            flops=flops, transcendentals=B * _OUT_, bytes_accessed=bytes_accessed),
    )(xt, w1, b1c, w2, b2c, w3, b3c)

    return out_t[:, :B].T                                  # back to [B, 2]


def init_params(key):
    """nn.Linear-style init (uniform +/- 1/sqrt(fan_in)); weights stored [out, in]."""
    def linear(key, fan_in, fan_out):
        kw, kb = jax.random.split(key)
        bound = 1.0 / jnp.sqrt(jnp.float32(fan_in))
        w = jax.random.uniform(kw, (fan_out, fan_in), jnp.float32, -bound, bound)
        b = jax.random.uniform(kb, (fan_out,), jnp.float32, -bound, bound)
        return w, b

    k1, k2, k3 = jax.random.split(key, 3)
    w1, b1 = linear(k1, _IN_, _H1_)
    w2, b2 = linear(k2, _H1_, _H2_)
    w3, b3 = linear(k3, _H2_, _OUT_)
    return w1, b1, w2, b2, w3, b3


def reference_forward(x, params):
    """Pure-JAX reference with PyTorch nn.Linear semantics (x @ W.T + b)."""
    w1, b1, w2, b2, w3, b3 = params
    h1 = jnp.maximum(x @ w1.T + b1, 0.0)
    h2 = jnp.maximum(h1 @ w2.T + b2, 0.0)
    logits = h2 @ w3.T + b3
    return jax.nn.softmax(logits, axis=-1)


if __name__ == "__main__":
    key = jax.random.PRNGKey(0)
    kx, kx2, kp = jax.random.split(key, 3)
    params = init_params(kp)

    # Small smoke test: single-tile grid (block last dim == full batch).
    B = 8
    x = jax.random.normal(kx, (B, _IN_), jnp.float32)
    out = jax.block_until_ready(shallow_nn_forward(x, params))
    ref = reference_forward(x, params)
    assert out.shape == (B, _OUT_)
    assert jnp.allclose(out, ref, atol=2e-3, rtol=2e-3)
    assert jnp.allclose(jnp.sum(out, axis=-1), jnp.ones((B,)), atol=1e-5)

    # Moderate batch: multi-step grid (3 tiles of 128) with a padded tail tile.
    B2 = 300
    x2 = jax.random.normal(kx2, (B2, _IN_), jnp.float32)
    out2 = jax.block_until_ready(shallow_nn_forward(x2, params, tb=128))
    ref2 = reference_forward(x2, params)
    assert out2.shape == (B2, _OUT_)
    assert jnp.allclose(out2, ref2, atol=2e-3, rtol=2e-3)
    assert jnp.allclose(jnp.sum(out2, axis=-1), jnp.ones((B2,)), atol=1e-5)

    print("KERNEL_OK")
</pallas_src>

<mosaic_0001>
module attributes {stable_mosaic.version = 11 : i64} {
  func.func @_mlp_softmax_kernel(%arg0: i32, %arg1: memref<15x8xf32, #tpu.memory_space<vmem>>, %arg2: memref<16x15xf32, #tpu.memory_space<vmem>>, %arg3: memref<16x1xf32, #tpu.memory_space<vmem>>, %arg4: memref<16x16xf32, #tpu.memory_space<vmem>>, %arg5: memref<16x1xf32, #tpu.memory_space<vmem>>, %arg6: memref<2x16xf32, #tpu.memory_space<vmem>>, %arg7: memref<2x1xf32, #tpu.memory_space<vmem>>, %arg8: memref<2x8xf32, #tpu.memory_space<vmem>>) attributes {dimension_semantics = [#tpu.dimension_semantics<parallel>], iteration_bounds = array<i64: 1>, scalar_prefetch = 0 : i64, scratch_operands = 0 : i64, tpu.core_type = #tpu.core_type<tc>, window_params = [{transform_indices = @transform_0, window_bounds = array<i64: 15, 8>}, {pipeline_mode = #tpu.pipeline_mode<synchronous>, transform_indices = @transform_1, window_bounds = array<i64: 16, 15>}, {pipeline_mode = #tpu.pipeline_mode<synchronous>, transform_indices = @transform_2, window_bounds = array<i64: 16, 1>}, {pipeline_mode = #tpu.pipeline_mode<synchronous>, transform_indices = @transform_3, window_bounds = array<i64: 16, 16>}, {pipeline_mode = #tpu.pipeline_mode<synchronous>, transform_indices = @transform_4, window_bounds = array<i64: 16, 1>}, {pipeline_mode = #tpu.pipeline_mode<synchronous>, transform_indices = @transform_5, window_bounds = array<i64: 2, 16>}, {pipeline_mode = #tpu.pipeline_mode<synchronous>, transform_indices = @transform_6, window_bounds = array<i64: 2, 1>}, {transform_indices = @transform_7, window_bounds = array<i64: 2, 8>}]} {
    %c0 = arith.constant 0 : index
    %c0_0 = arith.constant 0 : index
    %0 = vector.load %arg1[%c0, %c0_0] : memref<15x8xf32, #tpu.memory_space<vmem>>, vector<15x8xf32>
    %c0_1 = arith.constant 0 : index
    %c0_2 = arith.constant 0 : index
    %1 = vector.load %arg2[%c0_1, %c0_2] : memref<16x15xf32, #tpu.memory_space<vmem>>, vector<16x15xf32>
    %cst = arith.constant dense<0.000000e+00> : vector<16x8xf32>
    %2 = tpu.matmul %1, %0, %cst {dimension_numbers = #tpu.dot_dimension_numbers<[1], [0], [0], [1], [0, 0, 1, 1], [], []>} : vector<16x15xf32>, vector<15x8xf32>, vector<16x8xf32> -> vector<16x8xf32>
    %c0_3 = arith.constant 0 : index
    %c0_4 = arith.constant 0 : index
    %3 = vector.load %arg3[%c0_3, %c0_4] : memref<16x1xf32, #tpu.memory_space<vmem>>, vector<16x1xf32>
    %4 = vector.broadcast %3 : vector<16x1xf32> to vector<16x8xf32>
    %5 = arith.addf %2, %4 : vector<16x8xf32>
    %cst_5 = arith.constant 0.000000e+00 : f32
    %6 = vector.broadcast %cst_5 : f32 to vector<16x8xf32>
    %7 = arith.maximumf %5, %6 : vector<16x8xf32>
    %c0_6 = arith.constant 0 : index
    %c0_7 = arith.constant 0 : index
    %8 = vector.load %arg4[%c0_6, %c0_7] : memref<16x16xf32, #tpu.memory_space<vmem>>, vector<16x16xf32>
    %cst_8 = arith.constant dense<0.000000e+00> : vector<16x8xf32>
    %9 = tpu.matmul %8, %7, %cst_8 {dimension_numbers = #tpu.dot_dimension_numbers<[1], [0], [0], [1], [0, 0, 1, 1], [], []>} : vector<16x16xf32>, vector<16x8xf32>, vector<16x8xf32> -> vector<16x8xf32>
    %c0_9 = arith.constant 0 : index
    %c0_10 = arith.constant 0 : index
    %10 = vector.load %arg5[%c0_9, %c0_10] : memref<16x1xf32, #tpu.memory_space<vmem>>, vector<16x1xf32>
    %11 = vector.broadcast %10 : vector<16x1xf32> to vector<16x8xf32>
    %12 = arith.addf %9, %11 : vector<16x8xf32>
    %cst_11 = arith.constant 0.000000e+00 : f32
    %13 = vector.broadcast %cst_11 : f32 to vector<16x8xf32>
    %14 = arith.maximumf %12, %13 : vector<16x8xf32>
    %c0_12 = arith.constant 0 : index
    %c0_13 = arith.constant 0 : index
    %15 = vector.load %arg6[%c0_12, %c0_13] : memref<2x16xf32, #tpu.memory_space<vmem>>, vector<2x16xf32>
    %cst_14 = arith.constant dense<0.000000e+00> : vector<2x8xf32>
    %16 = tpu.matmul %15, %14, %cst_14 {dimension_numbers = #tpu.dot_dimension_numbers<[1], [0], [0], [1], [0, 0, 1, 1], [], []>} : vector<2x16xf32>, vector<16x8xf32>, vector<2x8xf32> -> vector<2x8xf32>
    %c0_15 = arith.constant 0 : index
    %c0_16 = arith.constant 0 : index
    %17 = vector.load %arg7[%c0_15, %c0_16] : memref<2x1xf32, #tpu.memory_space<vmem>>, vector<2x1xf32>
    %18 = vector.broadcast %17 : vector<2x1xf32> to vector<2x8xf32>
    %19 = arith.addf %16, %18 : vector<2x8xf32>
    %cst_17 = arith.constant dense<0xFF800000> : vector<8xf32>
    %20 = vector.multi_reduction <maximumf>, %19, %cst_17 [0] : vector<2x8xf32> to vector<8xf32>
    %21 = vector.shape_cast %20 : vector<8xf32> to vector<1x8xf32>
    %22 = vector.broadcast %21 : vector<1x8xf32> to vector<2x8xf32>
    %23 = arith.subf %19, %22 : vector<2x8xf32>
    %24 = math.exp %23 : vector<2x8xf32>
    %cst_18 = arith.constant dense<0.000000e+00> : vector<8xf32>
    %25 = vector.multi_reduction <add>, %24, %cst_18 [0] : vector<2x8xf32> to vector<8xf32>
    %26 = vector.shape_cast %25 : vector<8xf32> to vector<1x8xf32>
    %27 = vector.broadcast %26 : vector<1x8xf32> to vector<2x8xf32>
    %28 = arith.divf %24, %27 : vector<2x8xf32>
    %c0_19 = arith.constant 0 : index
    %c0_20 = arith.constant 0 : index
    %29 = vector.load %arg8[%c0_19, %c0_20] : memref<2x8xf32, #tpu.memory_space<vmem>>, vector<2x8xf32>
    tpu.vector_store %arg8[%c0_19, %c0_20], %28 {strides = array<i32>} : memref<2x8xf32, #tpu.memory_space<vmem>>, vector<2x8xf32>,
    return
  }
  func.func @transform_0(%arg0: i32) -> (i32, i32) {
    %c0_i32 = arith.constant 0 : i32
    %c0_i32_0 = arith.constant 0 : i32
    return %c0_i32, %arg0 : i32, i32
  }
  func.func @transform_1(%arg0: i32) -> (i32, i32) {
    %c0_i32 = arith.constant 0 : i32
    %c0_i32_0 = arith.constant 0 : i32
    %c0_i32_1 = arith.constant 0 : i32
    return %c0_i32, %c0_i32_0 : i32, i32
  }
  func.func @transform_2(%arg0: i32) -> (i32, i32) {
    %c0_i32 = arith.constant 0 : i32
    %c0_i32_0 = arith.constant 0 : i32
    %c0_i32_1 = arith.constant 0 : i32
    return %c0_i32, %c0_i32_0 : i32, i32
  }
  func.func @transform_3(%arg0: i32) -> (i32, i32) {
    %c0_i32 = arith.constant 0 : i32
    %c0_i32_0 = arith.constant 0 : i32
    %c0_i32_1 = arith.constant 0 : i32
    return %c0_i32, %c0_i32_0 : i32, i32
  }
  func.func @transform_4(%arg0: i32) -> (i32, i32) {
    %c0_i32 = arith.constant 0 : i32
    %c0_i32_0 = arith.constant 0 : i32
    %c0_i32_1 = arith.constant 0 : i32
    return %c0_i32, %c0_i32_0 : i32, i32
  }
  func.func @transform_5(%arg0: i32) -> (i32, i32) {
    %c0_i32 = arith.constant 0 : i32
    %c0_i32_0 = arith.constant 0 : i32
    %c0_i32_1 = arith.constant 0 : i32
    return %c0_i32, %c0_i32_0 : i32, i32
  }
  func.func @transform_6(%arg0: i32) -> (i32, i32) {
    %c0_i32 = arith.constant 0 : i32
    %c0_i32_0 = arith.constant 0 : i32
    %c0_i32_1 = arith.constant 0 : i32
    return %c0_i32, %c0_i32_0 : i32, i32
  }
  func.func @transform_7(%arg0: i32) -> (i32, i32) {
    %c0_i32 = arith.constant 0 : i32
    %c0_i32_0 = arith.constant 0 : i32
    return %c0_i32, %arg0 : i32, i32
  }
}

</mosaic_0001>

<bundles_post_ra>
// kernel: tpu_custom_call.1
= control target key start
LH: loop header
LB: loop body
LE: loop exit
PB: predicated region body
PF: predicated region fallthrough
CT: control target
= control target key end

     0   :  { %vm50_vm0 = vcmask 1046528   ;;  %vm43_vm1 = vcmask 121856   ;;  %v248_v4 = vmov 0   ;;  %s335_s0 = inlined_call_operand.vmem [shape: f32[15,8], index: 0, kind: input, shape index: {}]   ;;  %s336_s1 = inlined_call_operand.vmem [shape: f32[16,15], index: 1, kind: input, shape index: {}]   ;;  %s337_s2 = inlined_call_operand.vmem [shape: f32[16,1], index: 2, kind: input, shape index: {}]   ;;  %s338_s3 = inlined_call_operand.vmem [shape: f32[16,16], index: 3, kind: input, shape index: {}]   ;;  %s339_s4 = inlined_call_operand.vmem [shape: f32[16,1], index: 4, kind: input, shape index: {}]   ;;  %s340_s5 = inlined_call_operand.vmem [shape: f32[2,16], index: 5, kind: input, shape index: {}]   ;;  %s341_s6 = inlined_call_operand.vmem [shape: f32[2,1], index: 6, kind: input, shape index: {}]   ;;  %s342_s7 = inlined_call_operand.hbm [shape: f32[2,8], index: 7, kind: output, shape index: {}]  }
   0x1   :  { %v28_v0 = vld [vmem:[%s335_s0 + $0x8] sm:$0x7f]  ;;  %v27_v1 = vld [vmem:[%s335_s0] sm:$0xff]  ;;  %215 = vset.pattern.permute.xlu0 %v248_v4  ;;  %216 = vset.pattern.permute.xlu1 %v248_v4 }
   0x2   :  { %205 = vmatpush.msk.msra.mxu0 %vm50_vm0, %v28_v0  ;;  %211 = vmatpush.msk.msra.mxu3 %vm50_vm0, %v28_v0  ;;  %v29_v2 = vld [vmem:[%s336_s1] sm:$0xff]  ;;  %v30_v3 = vld [vmem:[%s336_s1 + $0x8] sm:$0xff] }
   0x3   :  { %v32_v5 = vld [vmem:[%s337_s2 + $0x8] sm:$0xff] }
   0x4   :  { %12 = vsyncpa [#allocation3], 0  ;;  %69 = vmatpush.msra.mxu0 %v27_v1  ;;  %212 = vmatpush.msra.mxu3 %v27_v1  ;;  %v31_v6 = vld [vmem:[%s337_s2] sm:$0xff]  ;;  %v82_v7 = vld [vmem:[%s339_s4 + $0x8] sm:$0xff]  ;;  %vm93_vm2 = vcmask 130048   ;;  %vm155_vm3 = vcmask 58368  }
   0x5   :  { %206 = vmatmul.msk.f32.vlgmr.msra.gmra.mxu0 %vm43_vm1, %v29_v2  ;;  %207 = vmatmul.msk.f32.vlgmr.msra.gmra.mxu3 %vm43_vm1, %v30_v3  ;;  %v81_v8 = vld [vmem:[%s339_s4] sm:$0xff]  ;;  %v80_v18 = vld [vmem:[%s338_s3 + $0x8] sm:$0xff]  ;;  %s196_s22 = sshll.u32 %s342_s7, 4  ;;  %s197_s22 = int_to_ptr.hbm [resolvable:$true] %s196_s22 }
   0x6   :  { %40 = vperm.xlu0 %215, %v32_v5   ;;  %217 = vset.pattern.permute.xlu2 %v248_v4  ;;  %v79_v17 = vld [vmem:[%s338_s3] sm:$0xff]  ;;  %s249_s3 = smov [#allocation2]  }
   0x7   :  { %90 = vperm.xlu1 %216, %v82_v7   ;;  %v126_v19 = vld [vmem:[%s341_s6] sm:$0x3] }
   0x8   :  { %129 = vperm.xlu2 %217, %v126_v19   ;;  %v125_v28 = vld [vmem:[%s340_s5] sm:$0x3]  ;;  %s194_s5 = sshll.u32 %s249_s3, 4  ;;  %s195_s5 = int_to_ptr.vmem [resolvable:$true] %s194_s5 }
   0xe   :  { %35 = vperm.xlu0 %215, %v31_v6  }
   0xf   :  { %85 = vperm.xlu1 %216, %v81_v8  }
  0x62   :  { %v130_v29 = vpop.permute.xlu2 %129 }
  0x78   :  { %v41_v9 = vpop.permute.xlu0 %40 }
  0x79   :  { %v91_v20 = vpop.permute.xlu1 %90 }
  0x80   :  { %v36_v10 = vpop.permute.xlu0 %35 }
  0x81   :  { %v86_v22 = vpop.permute.xlu1 %85 }
  0x82   :  { %v71_v11 = vpop.f32.mrf.mxu0 }
  0x83   :  { %v72_v13 = vadd.f32 %v71_v11, %v36_v10 }
  0x85   :  { %v77_v16 = vmax.f32 %v72_v13, 0.0 }
  0x88   :  { %v74_v12 = vpop.f32.mrf.mxu3 }
  0x89   :  { %v75_v14 = vadd.f32 %v74_v12, %v41_v9 }
  0x8b   :  { %v78_v15 = vmax.f32 %v75_v14, 0.0 }
  0x8d   :  { %114 = vmatpush.msra.mxu1 %v78_v15 }
  0x8f   :  { %115 = vmatpush.msra.mxu1 %v77_v16 }
  0x90   :  { %208 = vmatmul.msk.f32.vlgmr.msra.gmra.mxu1 %vm93_vm2, %v79_v17 }
  0x98   :  { %209 = vmatmul.msk.f32.gmra.mxu1 %vm93_vm2, %v80_v18 }
 0x10d   :  { %v117_v21 = vpop.f32.mrf.mxu1 }
 0x10e   :  { %v118_v24 = vadd.f32 %v117_v21, %v86_v22 }
 0x110   :  { %v123_v27 = vmax.f32 %v118_v24, 0.0 }
 0x115   :  { %v120_v23 = vpop.f32.mrf.mxu1 }
 0x116   :  { %v121_v25 = vadd.f32 %v120_v23, %v91_v20 }
 0x118   :  { %v124_v26 = vmax.f32 %v121_v25, 0.0 }
 0x11a   :  { %149 = vmatpush.msra.mxu2 %v124_v26 }
 0x11c   :  { %150 = vmatpush.msra.mxu2 %v123_v27 }
 0x11d   :  { %210 = vmatmul.msk.f32.vlgmr.msra.gmra.mxu2 %vm93_vm2, %v125_v28 }
 0x1a0   :  { %v152_v30 = vpop.f32.mrf.mxu2 }
 0x1a1   :  { %v153_v31 = vadd.f32 %v152_v30, %v130_v29 }
 0x1a3   :  { %v156_v32 = vsel %vm155_vm3, %v153_v31, -inf }
 0x1a4   :  { %v157_v33 = vrot.slane %v156_v32, 4 }
 0x1a6   :  { %v158_v34 = vmax.f32 %v156_v32, %v157_v33 }
 0x1a8   :  { %v159_v35 = vrot.slane %v158_v34, 2 }
 0x1aa   :  { %v160_v36 = vmax.f32 %v158_v34, %v159_v35 }
 0x1ac   :  { %v161_v37 = vrot.slane %v160_v36, 1 }
 0x1ae   :  { %v162_v38 = vmax.f32 %v160_v36, %v161_v37 }
 0x1b0   :  { %v163_v39 = vsub.f32 %v153_v31, %v162_v38 }
 0x1b2   :  { %v164_v40 = vmul.f32 1.442695, %v163_v39 }
 0x1b4   :  { %218 = vpow2.f32 %v164_v40 }
 0x1ba   :  { %v219_v41 = vpop.eup %218 }
 0x1bb   :  { %v166_v42 = vsel %vm155_vm3, %v219_v41, 0.0 }
 0x1bc   :  { %v167_v43 = vrot.slane %v166_v42, 4 }
 0x1be   :  { %v168_v44 = vadd.f32 %v167_v43, %v166_v42 }
 0x1c0   :  { %v169_v45 = vrot.slane %v168_v44, 2 }
 0x1c2   :  { %v170_v46 = vadd.f32 %v169_v45, %v168_v44 }
 0x1c4   :  { %v171_v47 = vrot.slane %v170_v46, 1 }
 0x1c6   :  { %v172_v48 = vadd.f32 %v171_v47, %v170_v46 }
 0x1c8   :  { %220 = vrcp.f32 %v172_v48  ;;  %v184_v52 = vand.u32 2147483648, %v172_v48  ;;  %v182_v54 = vand.u32 2147483647, %v172_v48  ;;  %vm178_vm5 = vweird.f32 %v172_v48 }
 0x1ca   :  { %v185_v56 = vor.u32 1.1754944e-38, %v184_v52  ;;  %vm183_vm7 = vcmp.eq.f32.partialorder %v182_v54, 8.507059e+37 }
 0x1ce   :  { %v221_v49 = vpop.eup %220 }
 0x1cf   :  { %v174_v50 = vmul.f32 %v221_v49, %v172_v48  ;;  %vm179_vm4 = vweird.f32 %v221_v49 }
 0x1d0   :  { %vm180_vm6 = vmor %vm178_vm5, %vm179_vm4 }
 0x1d1   :  { %v175_v51 = vsub.f32 1.0, %v174_v50 }
 0x1d3   :  { %v176_v53 = vmul.f32 %v221_v49, %v175_v51 }
 0x1d5   :  { %v177_v55 = vadd.f32 %v221_v49, %v176_v53 }
 0x1d7   :  { %v181_v57 = vsel %vm180_vm6, %v221_v49, %v177_v55 }
 0x1d8   :  { %v186_v58 = vsel %vm183_vm7, %v185_v56, %v181_v57 }
 0x1d9   :  { %v187_v59 = vmul.f32 %v219_v41, %v186_v58 }
 0x1db   :  { %188 = vst.msk [vmem:[#allocation2] sm:$0x3] %vm155_vm3, %v187_v59 }
 0x1dc   :  { %199 = dma.vmem_to_hbm [thread:$0]  %s195_s5, 32, %s197_s22, [#allocation3]  }
 0x1dd   :  { %246 = dma.done.wait [#allocation3], 32  }
 0x1de   :  { %247 = vsyncadd [#allocation3], 4294967264 }
 0x1df   :  { %204 = vsyncpa [#allocation3], 1 }

</bundles_post_ra>
